<compile_context>
chip_gen: v5e
topology: v5e:2x2
jax: 0.10.0
libtpu: 0.0.40
codegen_flags: <defaults>
</compile_context>

<pallas_src>
import jax
import jax.numpy as jnp
from jax.experimental import pallas as pl
from jax.experimental.pallas import tpu as pltpu

_LANE = 128
_SUBLANE = 8


def _ceil_to(v: int, m: int) -> int:
    return -(-v // m) * m


def _vmem_capacity_bytes() -> int:
    """Physical VMEM of the current chip; conservative fallback (v7x-sized)."""
    try:
        info = pltpu.get_tpu_info()
        for name in ("vmem_capacity_bytes", "vmem_bytes", "vmem_size_bytes"):
            cap = getattr(info, name, None)
            if cap:
                return int(cap)
    except Exception:
        pass
    return 64 << 20


def _generation_params():
    """(per-operand block byte target, vmem_limit cap) by TPU generation."""
    cap = _vmem_capacity_bytes()
    if cap >= (100 << 20):          # v5e / v6e: 128 MiB physical VMEM
        return 4 << 20, 64 << 20
    return 2 << 20, 48 << 20        # v7x: 64 MiB physical VMEM


def _pick_lane_block(s: int, rows_per_stripe: int, itemsize: int,
                     target_bytes: int) -> int:
    """Last-dim block: multiple of 128 (or the full extent s)."""
    target_elems = max(_LANE, target_bytes // itemsize)
    if s <= _LANE or rows_per_stripe * s <= target_elems:
        return s
    s_blk = max(_LANE, (target_elems // max(1, rows_per_stripe)) // _LANE * _LANE)
    s_blk = min(s_blk, (s // _LANE) * _LANE)
    if s % s_blk != 0:
        # Prefer a multiple-of-128 divisor of s (keeps every store lane-dense),
        # without shrinking below half the target block size.
        cand = s_blk
        while cand >= max(_LANE, s_blk // 2):
            if s % cand == 0:
                return cand
            cand -= _LANE
    return s_blk


# ----------------------------- kernels --------------------------------------


def _make_add2d_kernel(out_dtype):
    def kernel(x_ref, y_ref, o_ref):
        o_ref[...] = x_ref[...].astype(out_dtype) + y_ref[...].astype(out_dtype)
    return kernel


def _make_split_kernel(c_min: int, c_x: int, out_dtype):
    def kernel(x_ref, y_ref, o_ref):
        if c_min == c_x:
            # Full-block, unmasked store; y_ref may carry a few extra
            # (8-alignment) channels that are simply not read.
            o_ref[...] = (x_ref[...].astype(out_dtype)
                          + y_ref[:, :c_min, :].astype(out_dtype))
        else:
            # Residual add over the shared channels, pass-through for the rest.
            # (Kept as two stores: an in-register zero-extend of y was not
            # verified to lower to selects rather than a VMEM copy.)
            o_ref[:, :c_min, :] = (x_ref[:, :c_min, :].astype(out_dtype)
                                   + y_ref[:, :c_min, :].astype(out_dtype))
            o_ref[:, c_min:, :] = x_ref[:, c_min:, :].astype(out_dtype)
    return kernel


# ----------------------------- wrappers --------------------------------------


def _forward_equal_channels(x, y, out_dtype, target_bytes, vmem_cap):
    """Fast path for Cx == Cy: plain 2D add over (N*C, H*W)."""
    n, c, h, w = x.shape
    s = h * w
    rows = n * c
    x2 = x.reshape(rows, s)
    y2 = y.reshape(rows, s)
    itemsize = max(x.dtype.itemsize, y.dtype.itemsize,
                   jnp.dtype(out_dtype).itemsize)

    s_blk = _pick_lane_block(s, min(rows, _SUBLANE), itemsize, target_bytes)
    target_elems = max(_LANE, target_bytes // itemsize)
    r_blk = max(_SUBLANE, (target_elems // s_blk) // _SUBLANE * _SUBLANE)
    if r_blk >= rows:
        r_blk = rows

    # Ensure >= 2 grid steps so both v7x TensorCores get work.
    if pl.cdiv(rows, r_blk) * pl.cdiv(s, s_blk) < 2:
        if s_blk >= 2 * _LANE:
            s_blk = (s_blk // 2) // _LANE * _LANE
        elif rows > _SUBLANE:
            r_blk = max(_SUBLANE, (r_blk // 2) // _SUBLANE * _SUBLANE)

    grid = (pl.cdiv(rows, r_blk), pl.cdiv(s, s_blk))
    spec = pl.BlockSpec((r_blk, s_blk), lambda i, j: (i, j))

    blk_bytes = (_ceil_to(r_blk, _SUBLANE) * _ceil_to(s_blk, _LANE)
                 * (x.dtype.itemsize + y.dtype.itemsize
                    + jnp.dtype(out_dtype).itemsize))
    vmem_limit = int(min(vmem_cap, 2 * blk_bytes + (8 << 20)))

    out2 = pl.pallas_call(
        _make_add2d_kernel(out_dtype),
        out_shape=jax.ShapeDtypeStruct((rows, s), out_dtype),
        grid=grid,
        in_specs=[spec, spec],
        out_specs=spec,
        compiler_params=pltpu.CompilerParams(
            dimension_semantics=("parallel", "parallel"),
            vmem_limit_bytes=vmem_limit,
        ),
    )(x2, y2)
    return out2.reshape(n, c, h, w)


def _forward_split_channels(x, y, out_dtype, target_bytes, vmem_cap):
    """General path (Cx != Cy): (N, C, H*W) blocks, channel split in-kernel."""
    n, c_x, h, w = x.shape
    c_y = y.shape[1]
    c_min = min(c_x, c_y)
    s = h * w
    x3 = x.reshape(n, c_x, s)
    y3 = y.reshape(n, c_y, s)
    itemsize = max(x.dtype.itemsize, y.dtype.itemsize,
                   jnp.dtype(out_dtype).itemsize)

    # Only fetch an 8-aligned superset of the y channels actually used; an
    # 8-multiple block that does not span all of Cy is legal.
    y_c_blk = min(c_y, _ceil_to(c_min, _SUBLANE))

    c_x_pad = _ceil_to(c_x, _SUBLANE)  # sublane-padded footprint per stripe
    s_blk = _pick_lane_block(s, c_x_pad, itemsize, target_bytes)
    target_elems = max(_LANE, target_bytes // itemsize)
    b_blk = int(max(1, min(n, target_elems // (c_x_pad * s_blk))))

    # Ensure >= 2 grid steps so both v7x TensorCores get work.
    if pl.cdiv(n, b_blk) * pl.cdiv(s, s_blk) < 2:
        if s_blk >= 2 * _LANE:
            s_blk = (s_blk // 2) // _LANE * _LANE
        elif b_blk >= 2:
            b_blk = (b_blk + 1) // 2

    grid = (pl.cdiv(n, b_blk), pl.cdiv(s, s_blk))
    x_spec = pl.BlockSpec((b_blk, c_x, s_blk), lambda bi, si: (bi, 0, si))
    y_spec = pl.BlockSpec((b_blk, y_c_blk, s_blk), lambda bi, si: (bi, 0, si))
    o_spec = pl.BlockSpec((b_blk, c_x, s_blk), lambda bi, si: (bi, 0, si))

    blk_bytes = b_blk * _ceil_to(s_blk, _LANE) * (
        c_x_pad * x.dtype.itemsize
        + _ceil_to(y_c_blk, _SUBLANE) * y.dtype.itemsize
        + c_x_pad * jnp.dtype(out_dtype).itemsize)
    vmem_limit = int(min(vmem_cap, 2 * blk_bytes + (8 << 20)))

    out3 = pl.pallas_call(
        _make_split_kernel(c_min, c_x, out_dtype),
        out_shape=jax.ShapeDtypeStruct((n, c_x, s), out_dtype),
        grid=grid,
        in_specs=[x_spec, y_spec],
        out_specs=o_spec,
        compiler_params=pltpu.CompilerParams(
            dimension_semantics=("parallel", "parallel"),
            vmem_limit_bytes=vmem_limit,
        ),
    )(x3, y3)
    return out3.reshape(n, c_x, h, w)


def pass_channel_residual(x: jax.Array, y: jax.Array) -> jax.Array:
    """Pallas implementation of PassChannelResidual.forward(x, y)."""
    n, c_x, h, w = x.shape
    n_y, c_y, h_y, w_y = y.shape
    assert n == n_y and h == h_y and w == w_y, "batch / spatial dims must match"

    out_dtype = jnp.promote_types(x.dtype, y.dtype)
    c_min = min(c_x, c_y)
    s = h * w

    # Degenerate cases need no kernel at all.
    if n == 0 or c_x == 0 or s == 0:
        return jnp.zeros((n, c_x, h, w), out_dtype)
    if c_min == 0:  # y contributes nothing
        return x.astype(out_dtype)

    target_bytes, vmem_cap = _generation_params()

    if c_x == c_y:
        return _forward_equal_channels(x, y, out_dtype, target_bytes, vmem_cap)
    return _forward_split_channels(x, y, out_dtype, target_bytes, vmem_cap)


# ----------------------------- tests -----------------------------------------


def _reference(x, y):
    n, c_x, h, w = x.shape
    c_y = y.shape[1]
    if c_x > c_y:
        pad = jnp.zeros((n, c_x - c_y, h, w), dtype=y.dtype)
        return x + jnp.concatenate([y, pad], axis=1)
    return y[:, :c_x] + x


if __name__ == "__main__":
    key = jax.random.PRNGKey(0)
    keys = jax.random.split(key, 8)

    # Case 1: x has MORE channels than y (y is zero-padded along channels).
    x1 = jax.random.normal(keys[0], (2, 6, 16, 16), dtype=jnp.float32)
    y1 = jax.random.normal(keys[1], (2, 4, 16, 16), dtype=jnp.float32)
    out1 = jax.block_until_ready(pass_channel_residual(x1, y1))
    assert out1.shape == (2, 6, 16, 16)
    assert jnp.allclose(out1, _reference(x1, y1), atol=1e-6), "pad-y branch"

    # Case 2: x has FEWER channels than y (y is truncated along channels).
    x2 = jax.random.normal(keys[2], (2, 4, 16, 16), dtype=jnp.float32)
    y2 = jax.random.normal(keys[3], (2, 6, 16, 16), dtype=jnp.float32)
    out2 = jax.block_until_ready(pass_channel_residual(x2, y2))
    assert out2.shape == (2, 4, 16, 16)
    assert jnp.allclose(out2, _reference(x2, y2), atol=1e-6), "truncate-y branch"

    # Case 3: equal channel counts (2D fast path).
    x3 = jax.random.normal(keys[4], (2, 4, 16, 16), dtype=jnp.float32)
    y3 = jax.random.normal(keys[5], (2, 4, 16, 16), dtype=jnp.float32)
    out3 = jax.block_until_ready(pass_channel_residual(x3, y3))
    assert out3.shape == (2, 4, 16, 16)
    assert jnp.allclose(out3, _reference(x3, y3), atol=1e-6), "equal-c fast path"

    # Case 4: wide y, narrow x -> trimmed (8-aligned) y channel block < Cy.
    x4 = jax.random.normal(keys[6], (2, 4, 16, 16), dtype=jnp.float32)
    y4 = jax.random.normal(keys[7], (2, 12, 16, 16), dtype=jnp.float32)
    out4 = jax.block_until_ready(pass_channel_residual(x4, y4))
    assert out4.shape == (2, 4, 16, 16)
    assert jnp.allclose(out4, _reference(x4, y4), atol=1e-6), "trimmed-y block"

    print("KERNEL_OK")
</pallas_src>

<mosaic_0001>
module attributes {stable_mosaic.version = 11 : i64} {
  func.func @kernel(%arg0: i32, %arg1: i32, %arg2: memref<2x6x128xf32, #tpu.memory_space<vmem>>, %arg3: memref<2x4x128xf32, #tpu.memory_space<vmem>>, %arg4: memref<2x6x128xf32, #tpu.memory_space<vmem>>) attributes {dimension_semantics = [#tpu.dimension_semantics<parallel>, #tpu.dimension_semantics<parallel>], iteration_bounds = array<i64: 1, 2>, scalar_prefetch = 0 : i64, scratch_operands = 0 : i64, tpu.core_type = #tpu.core_type<tc>, window_params = [{transform_indices = @transform_0, window_bounds = array<i64: 2, 6, 128>}, {transform_indices = @transform_1, window_bounds = array<i64: 2, 4, 128>}, {transform_indices = @transform_2, window_bounds = array<i64: 2, 6, 128>}]} {
    %c0 = arith.constant 0 : index
    %c0_0 = arith.constant 0 : index
    %c0_1 = arith.constant 0 : index
    %0 = vector.load %arg2[%c0, %c0_0, %c0_1] : memref<2x6x128xf32, #tpu.memory_space<vmem>>, vector<2x4x128xf32>
    %c0_2 = arith.constant 0 : index
    %c0_3 = arith.constant 0 : index
    %c0_4 = arith.constant 0 : index
    %1 = vector.load %arg3[%c0_2, %c0_3, %c0_4] : memref<2x4x128xf32, #tpu.memory_space<vmem>>, vector<2x4x128xf32>
    %2 = arith.addf %0, %1 : vector<2x4x128xf32>
    %c0_5 = arith.constant 0 : index
    %c0_6 = arith.constant 0 : index
    %c0_7 = arith.constant 0 : index
    %3 = vector.load %arg4[%c0_5, %c0_6, %c0_7] : memref<2x6x128xf32, #tpu.memory_space<vmem>>, vector<2x4x128xf32>
    tpu.vector_store %arg4[%c0_5, %c0_6, %c0_7], %2 {strides = array<i32>} : memref<2x6x128xf32, #tpu.memory_space<vmem>>, vector<2x4x128xf32>,
    %c0_8 = arith.constant 0 : index
    %c4 = arith.constant 4 : index
    %c0_9 = arith.constant 0 : index
    %4 = vector.load %arg2[%c0_8, %c4, %c0_9] : memref<2x6x128xf32, #tpu.memory_space<vmem>>, vector<2x2x128xf32>
    %c0_10 = arith.constant 0 : index
    %c4_11 = arith.constant 4 : index
    %c0_12 = arith.constant 0 : index
    %5 = vector.load %arg4[%c0_10, %c4_11, %c0_12] : memref<2x6x128xf32, #tpu.memory_space<vmem>>, vector<2x2x128xf32>
    tpu.vector_store %arg4[%c0_10, %c4_11, %c0_12], %4 {strides = array<i32>} : memref<2x6x128xf32, #tpu.memory_space<vmem>>, vector<2x2x128xf32>,
    return
  }
  func.func @transform_0(%arg0: i32, %arg1: i32) -> (i32, i32, i32) {
    %c0_i32 = arith.constant 0 : i32
    %c0_i32_0 = arith.constant 0 : i32
    return %arg0, %c0_i32, %arg1 : i32, i32, i32
  }
  func.func @transform_1(%arg0: i32, %arg1: i32) -> (i32, i32, i32) {
    %c0_i32 = arith.constant 0 : i32
    %c0_i32_0 = arith.constant 0 : i32
    return %arg0, %c0_i32, %arg1 : i32, i32, i32
  }
  func.func @transform_2(%arg0: i32, %arg1: i32) -> (i32, i32, i32) {
    %c0_i32 = arith.constant 0 : i32
    %c0_i32_0 = arith.constant 0 : i32
    return %arg0, %c0_i32, %arg1 : i32, i32, i32
  }
}

</mosaic_0001>

<bundles_post_ra>
// kernel: tpu_custom_call.1
= control target key start
LH: loop header
LB: loop body
LE: loop exit
PB: predicated region body
PF: predicated region fallthrough
CT: control target
= control target key end

     0   :  { %s532_s9 = smov 0   ;;  %s534_s10 = smov 0   ;;  %s617_s0 = inlined_call_operand.vmem [shape: f32[2,6,256], index: 0, kind: input, shape index: {}]   ;;  %s618_s1 = inlined_call_operand.vmem [shape: f32[2,4,256], index: 1, kind: input, shape index: {}]   ;;  %s619_s2 = inlined_call_operand.vmem [shape: f32[2,6,256], index: 2, kind: output, shape index: {}]  }
   0x1   :  { %s536_s11 = smov 0   ;;  %s538_s12 = smov 0  }
   0x2   :  { %s540_s13 = smov 0  }
   0x3 LB: > { %s21_s14 = sadd.s32 1, %s511_s12  ;;  %s421_s15 = sadd.s32 4294967295, %s515_s13   ;;  %s515_s13 = sphi %s540_s13, %s12_s13   ;;  %s511_s12 = sphi %s538_s12, %s625_s12   ;;  %s507_s11 = sphi %s536_s11, %s624_s11   ;;  %s503_s10 = sphi %s534_s10, %s623_s10   ;;  %s499_s9 = sphi %s532_s9, %s622_s9  }
   0x4   : > { %p22_p0 = scmp.ge.s32.totalorder %s21_s14, 2  ;;  %p40_p1 = scmp.ne.s32.totalorder %s503_s10, %s499_s9 }
   0x5   : > { %p41_p2 = scmp.eq.s32.totalorder %s515_s13, 0  ;;  %p100_p4 = scmp.eq.s32.totalorder %s421_s15, 1 }
   0x6   : > { %s627_s14 = smov (%p22_p0, %s21_s14), 0  ;;  %s33_s18 = sadd.s32 1, %s503_s10 }
   0x7   : > { %p564_p3 = por %p41_p2, %p40_p1  ;;  %s29_s17 = ssub.s32 %s511_s12, %s627_s14 }
   0x8   : > { %p31_p5 = scmp.eq.s32.totalorder %s29_s17, 0  ;;  %p571_p6 = por %p100_p4, %p40_p1 }
   0x9   : > { %p424_p7 = scmp.ge.s32.totalorder %s515_s13, 2 }
   0xa   : > { %s576_s20 = scalar_select %p31_p5, %s503_s10, %s33_s18  }
   0xb   : > { %122 = sbr.rel (%p424_p7) target bundleno = 28 (0x1c), region = 16 }
  0x10   : > { %125 = sbr.rel (!%p564_p3) target bundleno = 22 (0x16), region = 20  ;;  %s127_s21 = sand.u32 (%p564_p3), 1, %s503_s10  }
  0x11   : > { %s426_s22 = sshll.u32 (%p564_p3), %s511_s12, 3  ;;  %s425_s23 = sshll.u32 (%p564_p3), %s127_s21, 4 }
  0x12   : > { %s134_s26 = scalar_lea.vmem (%p564_p3), %s617_s0, %s426_s22  ;;  %s129_s27 = scalar_lea.vmem (%p564_p3), [#allocation2], %s425_s23 }
  0x13   : > { %v165_v0 = vld [vmem:[%s134_s26] sm:$0xff] (%p564_p3)  ;;  %v167_v1 = vld [vmem:[%s134_s26 + $0x10] sm:$0xff] (%p564_p3) }
  0x14   : > { %166 = vst [vmem:[%s129_s27] sm:$0xff] (%p564_p3), %v165_v0 }
  0x15   : > { %168 = vst [vmem:[%s129_s27 + $0x8] sm:$0xff] %v167_v1 }
  0x16 PF: > { %174 = sbr.rel (!%p564_p3) target bundleno = 28 (0x1c), region = 58  ;;  %s176_s28 = sand.u32 (%p564_p3), 1, %s503_s10  }
  0x17   : > { %s428_s29 = sshll.u32 (%p564_p3), %s511_s12, 2  ;;  %s427_s30 = sshll.u32 (%p564_p3), %s176_s28, 3 }
  0x18   : > { %s183_s5 = scalar_lea.vmem (%p564_p3), %s618_s1, %s428_s29  ;;  %s178_s6 = scalar_lea.vmem (%p564_p3), [#allocation3], %s427_s30 }
  0x19   : > { %v200_v2 = vld [vmem:[%s183_s5] sm:$0xf] (%p564_p3)  ;;  %v202_v3 = vld [vmem:[%s183_s5 + $0x8] sm:$0xf] (%p564_p3) }
  0x1a   : > { %201 = vst [vmem:[%s178_s6] sm:$0xf] (%p564_p3), %v200_v2 }
  0x1b   : > { %203 = vst [vmem:[%s178_s6 + $0x4] sm:$0xf] %v202_v3 }
  0x1c PF: > { %p429_p8 = scmp.ge.s32.totalorder %s515_s13, 1  ;;  %p230_p9 = scmp.lt.s32.totalorder %s515_s13, 3 }
  0x1e   : > { %p231_p10 = pnand %p429_p8, %p230_p9 }
  0x1f   : > { %s237_s7 = sand.u32 (!%p231_p10), 1, %s499_s9  }
  0x20   : > { %234 = sbr.rel (%p231_p10) target bundleno = 51 (0x33), region = 99  ;;  %s430_s8 = sshll.u32 (!%p231_p10), %s237_s7, 4 }
  0x21   : > { %s431_s15 = sshll.u32 (!%p231_p10), %s237_s7, 3  ;;  %s239_s16 = scalar_lea.vmem (!%p231_p10), [#allocation2], %s430_s8 }
  0x22   : > { %s246_s17 = scalar_lea.vmem (!%p231_p10), [#allocation3], %s431_s15  ;;  %s267_s18 = scalar_lea.vmem (!%p231_p10), [#allocation4], %s430_s8 }
  0x25   : > { %v271_v4 = vld [vmem:[%s239_s16] sm:$0xf]  ;;  %v272_v7 = vld [vmem:[%s239_s16 + $0x8] sm:$0xf]  ;;  %v274_v8 = vld [vmem:[%s246_s17 + $0x4] sm:$0xf] }
  0x26   : > { %v273_v5 = vld [vmem:[%s246_s17] sm:$0xf]  ;;  %v279_v9 = vld [vmem:[%s239_s16 + $0x4] sm:$0x3]  ;;  %v276_v10 = vadd.f32 %v274_v8, %v272_v7  ;;  %v280_v11 = vld [vmem:[%s239_s16 + $0xc] sm:$0x3] }
  0x27   : > { %v275_v6 = vadd.f32 %v273_v5, %v271_v4  ;;  %281 = vst [vmem:[%s267_s18 + $0x4] sm:$0x3] %v279_v9  ;;  %289 = sbr.rel (!%p571_p6) target bundleno = 51 (0x33), region = 111  ;;  %s434_s9 = sshll.u32 (%p571_p6), %s507_s11, 3 }
  0x28   : > { %278 = vst [vmem:[%s267_s18 + $0x8] sm:$0xf] %v276_v10  ;;  %s294_s23 = scalar_lea.vmem (%p571_p6), %s619_s2, %s434_s9 }
  0x29   : > { %277 = vst [vmem:[%s267_s18] sm:$0xf] %v275_v6 }
  0x2a   : > { %282 = vst [vmem:[%s267_s18 + $0xc] sm:$0x3] %v280_v11 }
  0x30   : > { %v325_v12 = vld [vmem:[%s267_s18] sm:$0xff] }
  0x31   : > { %v327_v13 = vld [vmem:[%s267_s18 + $0x8] sm:$0xff]  ;;  %326 = vst [vmem:[%s294_s23] sm:$0xff] %v325_v12 }
  0x32   : > { %328 = vst [vmem:[%s294_s23 + $0x10] sm:$0xff] %v327_v13 }
  0x33 PF: > { %s12_s13 = sadd.s32 1, %s515_s13   ;;  %s622_s9 = smov %s503_s10 }
  0x34   : > { %p9_p11 = scmp.ge.s32.totalorder %s12_s13, 4   ;;  %s623_s10 = smov %s576_s20 }
  0x35   : > { %s624_s11 = smov %s511_s12  ;;  %s625_s12 = smov %s627_s14 }
  0x36   :  { %11 = sbr.rel (!%p9_p11) target bundleno = 3 (0x3), region = 188 }

</bundles_post_ra>
